<compile_context>
chip_gen: v7x
topology: tpu7x:2x2x1
jax: 0.10.0
libtpu: 0.0.40
codegen_flags: <defaults>
</compile_context>

<pallas_src>
import functools

import jax
import jax.numpy as jnp
from jax.experimental import pallas as pl
from jax.experimental.pallas import tpu as pltpu

F32 = jnp.float32


# ----------------------------- fused Pallas kernel -----------------------------

def _gat_kernel(x_ref, w_ref, w1c_ref, w1r_ref, adj_ref, out_ref, s_ref, *,
                nbatch, nheads, nodes, cl, alpha):
    """Fused multi-head GAT forward, all batches in one shot.

    x_ref   : (B*N, D)     node features, batch-stacked; D = C_in*L_pad + 1 (ones col = bias)
    w_ref   : (D, H*CL)    merged tap-folded conv0 weights (+ bias row)
    w1c_ref : (H*CL, H)    block-diagonal conv1 weight (column-form scores)
    w1r_ref : (H, H*CL)    its transpose (row-form scores)
    adj_ref : (N, N)
    out_ref : (B*N, H*CL)  head outputs concatenated on the lane axis (lane dense)
    s_ref   : (B, N, N)    pre-transpose attention of the last head
    """
    x = x_ref[...]                                   # (B*N, D)
    adj = adj_ref[...]                               # (N, N)

    # conv0 (1,Kt) conv + bias for all heads & batches: ONE MXU matmul.
    y_all = jnp.dot(x, w_ref[...], preferred_element_type=jnp.float32)       # (B*N, H*CL)

    # conv1 1x1 scores (f_1 == f_2) for all heads & batches: column + row orientations.
    f_col = jnp.dot(y_all, w1c_ref[...], preferred_element_type=jnp.float32)  # (B*N, H)
    f_row = jax.lax.dot_general(w1r_ref[...], y_all, (((1,), (1,)), ((), ())),
                                preferred_element_type=jnp.float32)           # (H, B*N)

    for b in range(nbatch):                          # static unroll, everything in VMEM
        r0, r1 = b * nodes, (b + 1) * nodes
        for h in range(nheads):
            # logits[q, k] = f[q] + f[k]
            logits = f_col[r0:r1, h:h + 1] + f_row[h:h + 1, r0:r1]            # (N, N)

            # leaky_relu(logits) + adj, row softmax (EUP approx reciprocal for the denom)
            z = jnp.where(logits >= 0, logits, alpha * logits) + adj
            z = z - jnp.max(z, axis=-1, keepdims=True)
            e = jnp.exp(z)
            att = e * pl.reciprocal(jnp.sum(e, axis=-1, keepdims=True), approx=True)

            # h_prime[q, c*L+l] = sum_n att[q, n] * y[n, c*L+l]; write straight into the
            # lane slice of the output (no concatenate).
            y_bh = y_all[r0:r1, h * cl:(h + 1) * cl]                           # (N, CL)
            out_ref[r0:r1, h * cl:(h + 1) * cl] = jnp.dot(
                att, y_bh, preferred_element_type=jnp.float32)

            if h == nheads - 1:        # S_coef comes from the last head (static unroll)
                s_ref[b, :, :] = att


# ----------------------------- one-time weight folding -----------------------------

def fold_gat_params(w0, b0, w1, *, pad=1):
    """Hoisted out of the per-call path; run once.

    w0: (H, C_out, C_in, Kt) conv0 weight,  b0: (H, C_out) conv0 bias,
    w1: (H, C_out*L_out)     conv1 weight (Conv1d 1x1, no bias).
    Returns (w_all (D, H*CL), w1_bd (H*CL, H), w1_bdT (H, H*CL)).
    """
    H, C_out, C_in, Kt = w0.shape
    L_out = w1.shape[1] // C_out                   # conv1 channels = C_out * length
    L_pad = L_out + Kt - 1
    CL = C_out * L_out
    D = C_in * L_pad + 1                           # +1: ones column carries the conv0 bias

    # Fold the Kt taps of the (1,Kt) conv into a banded (D, CL) matrix per head, then merge
    # the heads on the lane axis so conv0 is a single lane-dense matmul in-kernel.
    lp = jnp.arange(L_pad)[:, None, None]
    lo = jnp.arange(L_out)[None, :, None]
    kk = jnp.arange(Kt)[None, None, :]
    tap = (lp == lo + kk).astype(F32)                                     # (L_pad, L_out, Kt)
    ww = jnp.einsum('hoik,plk->hipol', w0.astype(F32), tap).reshape(H, C_in * L_pad, CL)
    b_row = jnp.repeat(b0.astype(F32), L_out, axis=-1).reshape(H, 1, CL)
    waug = jnp.concatenate([ww, b_row], axis=1)                           # (H, D, CL)
    w_all = jnp.transpose(waug, (1, 0, 2)).reshape(D, H * CL)             # (D, H*CL)

    # Block-diagonal conv1 weight: one matmul yields all heads' scores.
    w1f = w1.astype(F32)
    w1_bd = (w1f[:, :, None] * jnp.eye(H, dtype=F32)[:, None, :]).reshape(H * CL, H)
    w1_bdT = jnp.transpose(w1_bd)                                         # (H, H*CL)
    return w_all, w1_bd, w1_bdT


# ----------------------------- forward wrapper -----------------------------

def gat_forward(x, adj, w_all, w1_bd, w1_bdT, *, nheads, c_out, kt, alpha, pad=1):
    """x: (B, C_in, N, L), adj: (N, N); folded weights from fold_gat_params.
    Returns (out (B, H*C_out, N, L_out), S_coef (B, N, N))."""
    B, C_in, N, L = x.shape
    L_pad = L + 2 * pad
    L_out = L_pad - kt + 1
    CL = c_out * L_out
    H = nheads

    # Activation plumbing (per-call, tiny): nodes -> sublanes (batch-stacked),
    # (channel, time) -> lanes; ones column folds the conv0 bias.
    x_pad = jnp.pad(x, ((0, 0), (0, 0), (0, 0), (pad, pad)))
    x_t = jnp.transpose(x_pad, (0, 2, 1, 3)).reshape(B * N, C_in * L_pad)
    xaug = jnp.concatenate([x_t.astype(F32), jnp.ones((B * N, 1), F32)], axis=-1)

    kernel = functools.partial(_gat_kernel, nbatch=B, nheads=H, nodes=N,
                               cl=CL, alpha=float(alpha))
    vmem = pl.BlockSpec(memory_space=pltpu.MemorySpace.VMEM)
    out_flat, s_raw = pl.pallas_call(
        kernel,
        out_shape=(jax.ShapeDtypeStruct((B * N, H * CL), F32),
                   jax.ShapeDtypeStruct((B, N, N), F32)),
        in_specs=[vmem, vmem, vmem, vmem, vmem],
        out_specs=(vmem, vmem),
    )(xaug, w_all, w1_bd, w1_bdT, adj.astype(F32))

    # Back to PyTorch layout: out[b, h*C_out + c, q, l]
    out = out_flat.reshape(B, N, H, c_out, L_out)
    out = jnp.transpose(out, (0, 2, 3, 1, 4)).reshape(B, H * c_out, N, L_out)
    s_coef = jnp.swapaxes(s_raw, -1, -2)          # attention = att0.transpose(-1, -2)
    return out, s_coef


# ----------------------------- pure-JAX reference -----------------------------

def reference_forward(x, adj, w0, b0, w1, *, alpha):
    hp = jax.lax.Precision.HIGHEST
    H, C_out, C_in, Kt = w0.shape
    B, _, N, L = x.shape
    x_pad = jnp.pad(x, ((0, 0), (0, 0), (0, 0), (1, 1)))
    L_out = L + 2 - (Kt - 1)
    feats = []
    attention = None
    for h in range(H):
        acc = jnp.broadcast_to(b0[h][None, :, None, None], (B, C_out, N, L_out))
        for k in range(Kt):
            acc = acc + jnp.einsum('oi,binl->bonl', w0[h, :, :, k],
                                   x_pad[..., k:k + L_out], precision=hp)
        y = acc
        inp1 = jnp.transpose(y, (0, 1, 3, 2)).reshape(B, C_out * L_out, N)
        f1 = jnp.einsum('c,bcn->bn', w1[h], inp1, precision=hp)            # f_1 == f_2
        logits = f1[:, :, None] + f1[:, None, :]
        z = jnp.where(logits >= 0, logits, alpha * logits) + adj[None]
        att0 = jax.nn.softmax(z, axis=-1)
        attention = jnp.swapaxes(att0, -1, -2)
        h_prime = jnp.einsum('bcnl,bnq->bcql', y, attention, precision=hp)
        feats.append(h_prime)
    return jnp.concatenate(feats, axis=1), attention


# ----------------------------- main -----------------------------

if __name__ == "__main__":
    B, nfeat, nhid, N, L, Kt, nheads = 2, 4, 8, 16, 8, 3, 2
    alpha = 0.2                      # LeakyReLU slope; dropout is unused in forward
    L_out = L + 2 - (Kt - 1)         # conv0 padding=(0,1) keeps length for Kt=3

    key = jax.random.PRNGKey(0)
    ks = jax.random.split(key, 5)
    s = 0.1
    w0 = s * jax.random.normal(ks[0], (nheads, nhid, nfeat, Kt), F32)
    b0 = s * jax.random.normal(ks[1], (nheads, nhid), F32)
    w1 = s * jax.random.normal(ks[2], (nheads, nhid * L_out), F32)
    x = jax.random.normal(ks[3], (B, nfeat, N, L), F32)
    adj = 0.5 * jax.random.normal(ks[4], (N, N), F32)

    # one-time weight folding (not in the per-call hot path)
    w_all, w1_bd, w1_bdT = fold_gat_params(w0, b0, w1)
    w_all, w1_bd, w1_bdT = jax.block_until_ready((w_all, w1_bd, w1_bdT))

    fwd = jax.jit(functools.partial(gat_forward, nheads=nheads, c_out=nhid,
                                    kt=Kt, alpha=alpha))
    out, s_coef = fwd(x, adj, w_all, w1_bd, w1_bdT)
    out, s_coef = jax.block_until_ready((out, s_coef))
    assert out.shape == (B, nheads * nhid, N, L_out), out.shape
    assert s_coef.shape == (B, N, N), s_coef.shape

    ref_out, ref_s = reference_forward(x, adj, w0, b0, w1, alpha=alpha)
    err_out = float(jnp.max(jnp.abs(out - ref_out)))
    err_s = float(jnp.max(jnp.abs(s_coef - ref_s)))
    assert err_out < 5e-3, f"output mismatch: {err_out}"
    assert err_s < 5e-3, f"attention mismatch: {err_s}"
    print("KERNEL_OK")
</pallas_src>

<mosaic_0001>
module attributes {stable_mosaic.version = 11 : i64} {
  func.func @_gat_kernel(%arg0: memref<32x41xf32, #tpu.memory_space<vmem>>, %arg1: memref<41x128xf32, #tpu.memory_space<vmem>>, %arg2: memref<128x2xf32, #tpu.memory_space<vmem>>, %arg3: memref<2x128xf32, #tpu.memory_space<vmem>>, %arg4: memref<16x16xf32, #tpu.memory_space<vmem>>, %arg5: memref<32x128xf32, #tpu.memory_space<vmem>>, %arg6: memref<2x16x16xf32, #tpu.memory_space<vmem>>) attributes {dimension_semantics = [], scalar_prefetch = 0 : i64, scratch_operands = 0 : i64, tpu.core_type = #tpu.core_type<tc>} {
    %c0 = arith.constant 0 : index
    %c0_0 = arith.constant 0 : index
    %0 = vector.load %arg0[%c0, %c0_0] : memref<32x41xf32, #tpu.memory_space<vmem>>, vector<32x41xf32>
    %c0_1 = arith.constant 0 : index
    %c0_2 = arith.constant 0 : index
    %1 = vector.load %arg4[%c0_1, %c0_2] : memref<16x16xf32, #tpu.memory_space<vmem>>, vector<16x16xf32>
    %c0_3 = arith.constant 0 : index
    %c0_4 = arith.constant 0 : index
    %2 = vector.load %arg1[%c0_3, %c0_4] : memref<41x128xf32, #tpu.memory_space<vmem>>, vector<41x128xf32>
    %cst = arith.constant dense<0.000000e+00> : vector<32x128xf32>
    %3 = tpu.matmul %0, %2, %cst {dimension_numbers = #tpu.dot_dimension_numbers<[1], [0], [0], [1], [0, 0, 1, 1], [], []>} : vector<32x41xf32>, vector<41x128xf32>, vector<32x128xf32> -> vector<32x128xf32>
    %c0_5 = arith.constant 0 : index
    %c0_6 = arith.constant 0 : index
    %4 = vector.load %arg2[%c0_5, %c0_6] : memref<128x2xf32, #tpu.memory_space<vmem>>, vector<128x2xf32>
    %cst_7 = arith.constant dense<0.000000e+00> : vector<32x2xf32>
    %5 = tpu.matmul %3, %4, %cst_7 {dimension_numbers = #tpu.dot_dimension_numbers<[1], [0], [0], [1], [0, 0, 1, 1], [], []>} : vector<32x128xf32>, vector<128x2xf32>, vector<32x2xf32> -> vector<32x2xf32>
    %c0_8 = arith.constant 0 : index
    %c0_9 = arith.constant 0 : index
    %6 = vector.load %arg3[%c0_8, %c0_9] : memref<2x128xf32, #tpu.memory_space<vmem>>, vector<2x128xf32>
    %cst_10 = arith.constant dense<0.000000e+00> : vector<2x32xf32>
    %7 = tpu.matmul %6, %3, %cst_10 {dimension_numbers = #tpu.dot_dimension_numbers<[1], [1], [0], [0], [0, 0, 1, 0], [], []>} : vector<2x128xf32>, vector<32x128xf32>, vector<2x32xf32> -> vector<2x32xf32>
    %8 = vector.extract_strided_slice %5 {offsets = [0, 0], sizes = [16, 1], strides = [1, 1]} : vector<32x2xf32> to vector<16x1xf32>
    %9 = vector.extract_strided_slice %7 {offsets = [0, 0], sizes = [1, 16], strides = [1, 1]} : vector<2x32xf32> to vector<1x16xf32>
    %10 = vector.broadcast %8 : vector<16x1xf32> to vector<16x16xf32>
    %11 = vector.broadcast %9 : vector<1x16xf32> to vector<16x16xf32>
    %12 = arith.addf %10, %11 : vector<16x16xf32>
    %cst_11 = arith.constant 0.000000e+00 : f32
    %13 = vector.broadcast %cst_11 : f32 to vector<16x16xf32>
    %14 = arith.cmpf oge, %12, %13 : vector<16x16xf32>
    %cst_12 = arith.constant 2.000000e-01 : f32
    %15 = vector.broadcast %cst_12 : f32 to vector<16x16xf32>
    %16 = arith.mulf %15, %12 : vector<16x16xf32>
    %17 = arith.select %14, %12, %16 : vector<16x16xi1>, vector<16x16xf32>
    %18 = arith.addf %17, %1 : vector<16x16xf32>
    %cst_13 = arith.constant dense<0xFF800000> : vector<16xf32>
    %19 = vector.multi_reduction <maximumf>, %18, %cst_13 [1] : vector<16x16xf32> to vector<16xf32>
    %20 = vector.shape_cast %19 : vector<16xf32> to vector<16x1xf32>
    %21 = vector.broadcast %20 : vector<16x1xf32> to vector<16x16xf32>
    %22 = arith.subf %18, %21 : vector<16x16xf32>
    %23 = math.exp %22 : vector<16x16xf32>
    %cst_14 = arith.constant dense<0.000000e+00> : vector<16xf32>
    %24 = vector.multi_reduction <add>, %23, %cst_14 [1] : vector<16x16xf32> to vector<16xf32>
    %25 = vector.shape_cast %24 : vector<16xf32> to vector<16x1xf32>
    %26 = tpu.reciprocal %25 {approx = true} : vector<16x1xf32> -> vector<16x1xf32>
    %27 = vector.broadcast %26 : vector<16x1xf32> to vector<16x16xf32>
    %28 = arith.mulf %23, %27 : vector<16x16xf32>
    %29 = vector.extract_strided_slice %3 {offsets = [0, 0], sizes = [16, 64], strides = [1, 1]} : vector<32x128xf32> to vector<16x64xf32>
    %cst_15 = arith.constant dense<0.000000e+00> : vector<16x64xf32>
    %30 = tpu.matmul %28, %29, %cst_15 {dimension_numbers = #tpu.dot_dimension_numbers<[1], [0], [0], [1], [0, 0, 1, 1], [], []>} : vector<16x16xf32>, vector<16x64xf32>, vector<16x64xf32> -> vector<16x64xf32>
    %c0_16 = arith.constant 0 : index
    %c0_17 = arith.constant 0 : index
    %31 = vector.load %arg5[%c0_16, %c0_17] : memref<32x128xf32, #tpu.memory_space<vmem>>, vector<16x64xf32>
    tpu.vector_store %arg5[%c0_16, %c0_17], %30 {strides = array<i32>} : memref<32x128xf32, #tpu.memory_space<vmem>>, vector<16x64xf32>,
    %32 = vector.extract_strided_slice %5 {offsets = [0, 1], sizes = [16, 1], strides = [1, 1]} : vector<32x2xf32> to vector<16x1xf32>
    %33 = vector.extract_strided_slice %7 {offsets = [1, 0], sizes = [1, 16], strides = [1, 1]} : vector<2x32xf32> to vector<1x16xf32>
    %34 = vector.broadcast %32 : vector<16x1xf32> to vector<16x16xf32>
    %35 = vector.broadcast %33 : vector<1x16xf32> to vector<16x16xf32>
    %36 = arith.addf %34, %35 : vector<16x16xf32>
    %cst_18 = arith.constant 0.000000e+00 : f32
    %37 = vector.broadcast %cst_18 : f32 to vector<16x16xf32>
    %38 = arith.cmpf oge, %36, %37 : vector<16x16xf32>
    %cst_19 = arith.constant 2.000000e-01 : f32
    %39 = vector.broadcast %cst_19 : f32 to vector<16x16xf32>
    %40 = arith.mulf %39, %36 : vector<16x16xf32>
    %41 = arith.select %38, %36, %40 : vector<16x16xi1>, vector<16x16xf32>
    %42 = arith.addf %41, %1 : vector<16x16xf32>
    %cst_20 = arith.constant dense<0xFF800000> : vector<16xf32>
    %43 = vector.multi_reduction <maximumf>, %42, %cst_20 [1] : vector<16x16xf32> to vector<16xf32>
    %44 = vector.shape_cast %43 : vector<16xf32> to vector<16x1xf32>
    %45 = vector.broadcast %44 : vector<16x1xf32> to vector<16x16xf32>
    %46 = arith.subf %42, %45 : vector<16x16xf32>
    %47 = math.exp %46 : vector<16x16xf32>
    %cst_21 = arith.constant dense<0.000000e+00> : vector<16xf32>
    %48 = vector.multi_reduction <add>, %47, %cst_21 [1] : vector<16x16xf32> to vector<16xf32>
    %49 = vector.shape_cast %48 : vector<16xf32> to vector<16x1xf32>
    %50 = tpu.reciprocal %49 {approx = true} : vector<16x1xf32> -> vector<16x1xf32>
    %51 = vector.broadcast %50 : vector<16x1xf32> to vector<16x16xf32>
    %52 = arith.mulf %47, %51 : vector<16x16xf32>
    %53 = vector.extract_strided_slice %3 {offsets = [0, 64], sizes = [16, 64], strides = [1, 1]} : vector<32x128xf32> to vector<16x64xf32>
    %cst_22 = arith.constant dense<0.000000e+00> : vector<16x64xf32>
    %54 = tpu.matmul %52, %53, %cst_22 {dimension_numbers = #tpu.dot_dimension_numbers<[1], [0], [0], [1], [0, 0, 1, 1], [], []>} : vector<16x16xf32>, vector<16x64xf32>, vector<16x64xf32> -> vector<16x64xf32>
    %c0_23 = arith.constant 0 : index
    %c64 = arith.constant 64 : index
    %55 = vector.load %arg5[%c0_23, %c64] : memref<32x128xf32, #tpu.memory_space<vmem>>, vector<16x64xf32>
    tpu.vector_store %arg5[%c0_23, %c64], %54 {strides = array<i32>} : memref<32x128xf32, #tpu.memory_space<vmem>>, vector<16x64xf32>,
    %c0_24 = arith.constant 0 : index
    %c0_25 = arith.constant 0 : index
    %c0_26 = arith.constant 0 : index
    %56 = vector.load %arg6[%c0_24, %c0_25, %c0_26] : memref<2x16x16xf32, #tpu.memory_space<vmem>>, vector<1x16x16xf32>
    %57 = vector.shape_cast %56 : vector<1x16x16xf32> to vector<16x16xf32>
    %58 = vector.shape_cast %52 : vector<16x16xf32> to vector<1x16x16xf32>
    tpu.vector_store %arg6[%c0_24, %c0_25, %c0_26], %58 {strides = array<i32>} : memref<2x16x16xf32, #tpu.memory_space<vmem>>, vector<1x16x16xf32>,
    %59 = vector.extract_strided_slice %5 {offsets = [16, 0], sizes = [16, 1], strides = [1, 1]} : vector<32x2xf32> to vector<16x1xf32>
    %60 = vector.extract_strided_slice %7 {offsets = [0, 16], sizes = [1, 16], strides = [1, 1]} : vector<2x32xf32> to vector<1x16xf32>
    %61 = vector.broadcast %59 : vector<16x1xf32> to vector<16x16xf32>
    %62 = vector.broadcast %60 : vector<1x16xf32> to vector<16x16xf32>
    %63 = arith.addf %61, %62 : vector<16x16xf32>
    %cst_27 = arith.constant 0.000000e+00 : f32
    %64 = vector.broadcast %cst_27 : f32 to vector<16x16xf32>
    %65 = arith.cmpf oge, %63, %64 : vector<16x16xf32>
    %cst_28 = arith.constant 2.000000e-01 : f32
    %66 = vector.broadcast %cst_28 : f32 to vector<16x16xf32>
    %67 = arith.mulf %66, %63 : vector<16x16xf32>
    %68 = arith.select %65, %63, %67 : vector<16x16xi1>, vector<16x16xf32>
    %69 = arith.addf %68, %1 : vector<16x16xf32>
    %cst_29 = arith.constant dense<0xFF800000> : vector<16xf32>
    %70 = vector.multi_reduction <maximumf>, %69, %cst_29 [1] : vector<16x16xf32> to vector<16xf32>
    %71 = vector.shape_cast %70 : vector<16xf32> to vector<16x1xf32>
    %72 = vector.broadcast %71 : vector<16x1xf32> to vector<16x16xf32>
    %73 = arith.subf %69, %72 : vector<16x16xf32>
    %74 = math.exp %73 : vector<16x16xf32>
    %cst_30 = arith.constant dense<0.000000e+00> : vector<16xf32>
    %75 = vector.multi_reduction <add>, %74, %cst_30 [1] : vector<16x16xf32> to vector<16xf32>
    %76 = vector.shape_cast %75 : vector<16xf32> to vector<16x1xf32>
    %77 = tpu.reciprocal %76 {approx = true} : vector<16x1xf32> -> vector<16x1xf32>
    %78 = vector.broadcast %77 : vector<16x1xf32> to vector<16x16xf32>
    %79 = arith.mulf %74, %78 : vector<16x16xf32>
    %80 = vector.extract_strided_slice %3 {offsets = [16, 0], sizes = [16, 64], strides = [1, 1]} : vector<32x128xf32> to vector<16x64xf32>
    %cst_31 = arith.constant dense<0.000000e+00> : vector<16x64xf32>
    %81 = tpu.matmul %79, %80, %cst_31 {dimension_numbers = #tpu.dot_dimension_numbers<[1], [0], [0], [1], [0, 0, 1, 1], [], []>} : vector<16x16xf32>, vector<16x64xf32>, vector<16x64xf32> -> vector<16x64xf32>
    %c16 = arith.constant 16 : index
    %c0_32 = arith.constant 0 : index
    %82 = vector.load %arg5[%c16, %c0_32] : memref<32x128xf32, #tpu.memory_space<vmem>>, vector<16x64xf32>
    tpu.vector_store %arg5[%c16, %c0_32], %81 {strides = array<i32>} : memref<32x128xf32, #tpu.memory_space<vmem>>, vector<16x64xf32>,
    %83 = vector.extract_strided_slice %5 {offsets = [16, 1], sizes = [16, 1], strides = [1, 1]} : vector<32x2xf32> to vector<16x1xf32>
    %84 = vector.extract_strided_slice %7 {offsets = [1, 16], sizes = [1, 16], strides = [1, 1]} : vector<2x32xf32> to vector<1x16xf32>
    %85 = vector.broadcast %83 : vector<16x1xf32> to vector<16x16xf32>
    %86 = vector.broadcast %84 : vector<1x16xf32> to vector<16x16xf32>
    %87 = arith.addf %85, %86 : vector<16x16xf32>
    %cst_33 = arith.constant 0.000000e+00 : f32
    %88 = vector.broadcast %cst_33 : f32 to vector<16x16xf32>
    %89 = arith.cmpf oge, %87, %88 : vector<16x16xf32>
    %cst_34 = arith.constant 2.000000e-01 : f32
    %90 = vector.broadcast %cst_34 : f32 to vector<16x16xf32>
    %91 = arith.mulf %90, %87 : vector<16x16xf32>
    %92 = arith.select %89, %87, %91 : vector<16x16xi1>, vector<16x16xf32>
    %93 = arith.addf %92, %1 : vector<16x16xf32>
    %cst_35 = arith.constant dense<0xFF800000> : vector<16xf32>
    %94 = vector.multi_reduction <maximumf>, %93, %cst_35 [1] : vector<16x16xf32> to vector<16xf32>
    %95 = vector.shape_cast %94 : vector<16xf32> to vector<16x1xf32>
    %96 = vector.broadcast %95 : vector<16x1xf32> to vector<16x16xf32>
    %97 = arith.subf %93, %96 : vector<16x16xf32>
    %98 = math.exp %97 : vector<16x16xf32>
    %cst_36 = arith.constant dense<0.000000e+00> : vector<16xf32>
    %99 = vector.multi_reduction <add>, %98, %cst_36 [1] : vector<16x16xf32> to vector<16xf32>
    %100 = vector.shape_cast %99 : vector<16xf32> to vector<16x1xf32>
    %101 = tpu.reciprocal %100 {approx = true} : vector<16x1xf32> -> vector<16x1xf32>
    %102 = vector.broadcast %101 : vector<16x1xf32> to vector<16x16xf32>
    %103 = arith.mulf %98, %102 : vector<16x16xf32>
    %104 = vector.extract_strided_slice %3 {offsets = [16, 64], sizes = [16, 64], strides = [1, 1]} : vector<32x128xf32> to vector<16x64xf32>
    %cst_37 = arith.constant dense<0.000000e+00> : vector<16x64xf32>
    %105 = tpu.matmul %103, %104, %cst_37 {dimension_numbers = #tpu.dot_dimension_numbers<[1], [0], [0], [1], [0, 0, 1, 1], [], []>} : vector<16x16xf32>, vector<16x64xf32>, vector<16x64xf32> -> vector<16x64xf32>
    %c16_38 = arith.constant 16 : index
    %c64_39 = arith.constant 64 : index
    %106 = vector.load %arg5[%c16_38, %c64_39] : memref<32x128xf32, #tpu.memory_space<vmem>>, vector<16x64xf32>
    tpu.vector_store %arg5[%c16_38, %c64_39], %105 {strides = array<i32>} : memref<32x128xf32, #tpu.memory_space<vmem>>, vector<16x64xf32>,
    %c1 = arith.constant 1 : index
    %c0_40 = arith.constant 0 : index
    %c0_41 = arith.constant 0 : index
    %107 = vector.load %arg6[%c1, %c0_40, %c0_41] : memref<2x16x16xf32, #tpu.memory_space<vmem>>, vector<1x16x16xf32>
    %108 = vector.shape_cast %107 : vector<1x16x16xf32> to vector<16x16xf32>
    %109 = vector.shape_cast %103 : vector<16x16xf32> to vector<1x16x16xf32>
    tpu.vector_store %arg6[%c1, %c0_40, %c0_41], %109 {strides = array<i32>} : memref<2x16x16xf32, #tpu.memory_space<vmem>>, vector<1x16x16xf32>,
    return
  }
}

</mosaic_0001>

<bundles_post_ra>
// kernel: gat_forward.1
= control target key start
LH: loop header
LB: loop body
LE: loop exit
PB: predicated region body
PF: predicated region fallthrough
CT: control target
= control target key end

     0   :  { %vm34_vm0 = vcmask 334848   ;;  %vm47_vm1 = vcmask 1040384   ;;  %vm1181_vm2 = vmmov 1   ;;  %v1182_v37 = vmov 0.0|0.0   ;;  %s1189_s27 = smov 64   ;;  %s1465_s1 = inlined_call_operand.vmem [shape: f32[41,128], index: 1, kind: input, shape index: {}]   ;;  %s1466_s0 = inlined_call_operand.vmem [shape: f32[32,41], index: 0, kind: input, shape index: {}]   ;;  %s1467_s2 = inlined_call_operand.vmem [shape: f32[128,2], index: 2, kind: input, shape index: {}]   ;;  %s1468_s4 = inlined_call_operand.vmem [shape: f32[16,16], index: 4, kind: input, shape index: {}]   ;;  %s1469_s3 = inlined_call_operand.vmem [shape: f32[2,128], index: 3, kind: input, shape index: {}]   ;;  %s1470_s6 = inlined_call_operand.vmem [shape: f32[2,16,16], index: 6, kind: output, shape index: {1}]   ;;  %s1471_s5 = inlined_call_operand.vmem [shape: f32[32,128], index: 5, kind: output, shape index: {0}]  }
   0x1   :  { %v28_v0 = vld [vmem:[%s1465_s1] sm:$0xff]  ;;  %v29_v1 = vld [vmem:[%s1465_s1 + $0x8] sm:$0xff]  ;;  %v30_v2 = vld [vmem:[%s1465_s1 + $0x10] sm:$0xff]  ;;  %vm1183_vm4 = vmmov 0   ;;  %v1184_v38 = vmov 0.0   ;;  %v1185_v40 = vmov 0   ;;  %v318_v58 = vlaneseq }
   0x2   :  { %v1056_v3 = vpack.c.bf16 %v29_v1, %v28_v0  ;;  %v31_v4 = vld [vmem:[%s1465_s1 + $0x18] sm:$0xff]  ;;  %v32_v6 = vld [vmem:[%s1465_s1 + $0x20] sm:$0xff]  ;;  %v33_v7 = vld [vmem:[%s1465_s1 + $0x28] sm:$0x1]  ;;  %1133 = vset.pattern.permute.xlu1 %v1185_v40  ;;  %1134 = vset.pattern.permute.xlu0 %v1185_v40  ;;  %v1187_v55 = vmov 1   ;;  %vm613_vm7 = vcmask 261248  }
   0x3   :  { %v1060_v5 = vpack.c.bf16 %v31_v4, %v30_v2  ;;  %v22_v8 = vld [vmem:[%s1466_s0] sm:$0xff]  ;;  %v137_v10 = vld [vmem:[%s1467_s2 + $0x8] sm:$0xff]  ;;  %v138_v11 = vld [vmem:[%s1467_s2 + $0x10] sm:$0xff]  ;;  %v1064_v13 = vpack.c.bf16 %v33_v7, %v32_v6  ;;  %v319_v59 = vshrl.u32 %v318_v58, 7  ;;  %vm332_vm12 = vcmask 130048  }
   0x4   :  { %1057 = vmatprep.subr.bf16.mxu0 %v1056_v3  ;;  %973 = vmatprep.mubr.msk.f32.mxu0 %vm34_vm0, %v22_v8  ;;  %v136_v9 = vld [vmem:[%s1467_s2] sm:$0xff]  ;;  %v139_v12 = vld [vmem:[%s1467_s2 + $0x18] sm:$0xff]  ;;  %vm1065_vm3 = vmpackc.low %vm47_vm1, %vm1181_vm2  ;;  %vm436_vm15 = vcmask 523264  }
   0x5   :  { %1059 = vmatpush3.bf16.msra.mxu0 %v1056_v3  ;;  %v1070_v14 = vpack.c.bf16 %v137_v10, %v136_v9  ;;  %v1074_v15 = vpack.c.bf16 %v139_v12, %v138_v11  ;;  %v140_v16 = vld [vmem:[%s1467_s2 + $0x20] sm:$0xff]  ;;  %v141_v17 = vld [vmem:[%s1467_s2 + $0x28] sm:$0xff]  ;;  %v142_v19 = vld [vmem:[%s1467_s2 + $0x30] sm:$0xff]  ;;  %v449_v60 = vsub.s32 1, %v319_v59  ;;  %v320_v3 = vsub.s32 0, %v319_v59 }
   0x6   :  { %1061 = vmatprep.subr.bf16.mxu0 %v1060_v5  ;;  %v1078_v18 = vpack.c.bf16 %v141_v17, %v140_v16  ;;  %v143_v20 = vld [vmem:[%s1467_s2 + $0x38] sm:$0xff]  ;;  %v23_v21 = vld [vmem:[%s1466_s0 + $0x8] sm:$0xff]  ;;  %v24_v22 = vld [vmem:[%s1466_s0 + $0x10] sm:$0xff] }
   0x7   :  { %1071 = vmatprep.subr.bf16.mxu1 %v1070_v14  ;;  %v1082_v23 = vpack.c.bf16 %v143_v20, %v142_v19  ;;  %v144_v24 = vld [vmem:[%s1467_s2 + $0x40] sm:$0xff]  ;;  %v145_v25 = vld [vmem:[%s1467_s2 + $0x48] sm:$0xff]  ;;  %v25_v26 = vld [vmem:[%s1466_s0 + $0x18] sm:$0xff] }
   0x8   :  { %1073 = vmatpush3.bf16.msra.mxu1 %v1070_v14  ;;  %v1086_v27 = vpack.c.bf16 %v145_v25, %v144_v24  ;;  %v146_v28 = vld [vmem:[%s1467_s2 + $0x50] sm:$0xff]  ;;  %v147_v29 = vld [vmem:[%s1467_s2 + $0x58] sm:$0xff]  ;;  %v148_v31 = vld [vmem:[%s1467_s2 + $0x60] sm:$0xff] }
   0x9   :  { %1063 = vmatpush3.bf16.msra.mxu0 %v1060_v5  ;;  %1075 = vmatprep.subr.bf16.mxu1 %v1074_v15  ;;  %v1090_v30 = vpack.c.bf16 %v147_v29, %v146_v28  ;;  %v149_v32 = vld [vmem:[%s1467_s2 + $0x68] sm:$0xff]  ;;  %v150_v34 = vld [vmem:[%s1467_s2 + $0x70] sm:$0xff]  ;;  %v151_v35 = vld [vmem:[%s1467_s2 + $0x78] sm:$0xff]  ;;  %s1186_s2 = smov 16  }
   0xa   :  { %1066 = vmatprep.subr.msk.bf16.mxu0 %vm1065_vm3, %v1064_v13  ;;  %v1094_v33 = vpack.c.bf16 %v149_v32, %v148_v31  ;;  %v1098_v36 = vpack.c.bf16 %v151_v35, %v150_v34  ;;  %v1310_v39 = vld [vmem:[%s1468_s4] sm:$0xff]  ;;  %v1316_v41 = vld [vmem:[%s1468_s4 + $0x8] sm:$0xff] }
   0xb   :  { %605 = vrot.lane.b32.xlu1 %v1310_v39, %s1186_s2  ;;  %v237_v50 = vld [vmem:[%s1469_s3] sm:$0x3]  ;;  %s1188_s3 = smov 112  }
   0xc   :  { %1077 = vmatpush3.bf16.msra.mxu1 %v1074_v15 }
   0xd   :  { %1069 = vmatpush3.bf16.msk.msra.mxu0 %vm1065_vm3, %v1064_v13  ;;  %1079 = vmatprep.subr.bf16.mxu1 %v1078_v18 }
   0xe   :  { %1102 = vmatprep.subr.bf16.mxu0 %v1182_v37 }
   0xf   :  { %607 = vrot.lane.b32.xlu1 %v1316_v41, %s1186_s2 }
  0x10   :  { %974 = vmatmul.mubr.msk.f32.vlgmr.msra.gmra.mrb[0].mxu0 %vm34_vm0, %v23_v21  ;;  %1081 = vmatpush3.bf16.msra.mxu1 %v1078_v18 }
  0x11   :  { %976 = vmatprep.mubr.msk.f32.mxu0 %vm34_vm0, %v24_v22  ;;  %1083 = vmatprep.subr.bf16.mxu1 %v1082_v23 }
  0x14   :  { %977 = vmatmul.mubr.msk.f32.gmra.mrb[2].mxu0 %vm34_vm0, %v25_v26  ;;  %1085 = vmatpush3.bf16.msra.mxu1 %v1082_v23  ;;  %vm580_vm0 = vcmask 1048064  }
  0x15   :  { %1087 = vmatprep.subr.bf16.mxu1 %v1086_v27  ;;  %1025 = vmatprep.mubr.msk.f32.mxu0 %vm1183_vm4, %v1184_v38 }
  0x18   :  { %1089 = vmatpush3.bf16.msra.mxu1 %v1086_v27 }
  0x19   :  { %1091 = vmatprep.subr.bf16.mxu1 %v1090_v30 }
  0x1c   :  { %1093 = vmatpush3.bf16.msra.mxu1 %v1090_v30 }
  0x1d   :  { %1095 = vmatprep.subr.bf16.mxu1 %v1094_v33 }
  0x20   :  { %1097 = vmatpush3.bf16.msra.mxu1 %v1094_v33 }
  0x21   :  { %1099 = vmatprep.subr.bf16.mxu1 %v1098_v36 }
  0x24   :  { %1101 = vmatpush3.bf16.msra.mxu1 %v1098_v36 }
  0x7d   :  { %v606_v63 = vpop.permute.xlu1 %605 }
  0x81   :  { %v608_v5 = vpop.permute.xlu1 %607 }
  0xe3   :  { %v1319_v42 = vpop.f32.mrb[0].mxu0 }
  0xe4   :  { %v1321_v43 = vpop.f32.mrb[1].mxu0 }
  0xe5   :  { %v1139_v44 = vpack.i.bf16 %v1319_v42, %v1321_v43  ;;  %v1103_v45 = vpack.c.bf16 %v1319_v42, %v1321_v43  ;;  %1011 = vmatprep.mubr.f32.mxu1 %v1321_v43 }
  0xe6   :  { %1012 = vmatmul.mubr.f32.vlgmr.msra.gmra.mrb[0].mxu1 %v1319_v42 }
  0xe7   :  { %v1329_v46 = vpop.f32.mrb[2].mxu0  ;;  %1104 = vmatpush3.bf16.xpose.msra.mxu0 %v1103_v45 }
  0xe8   :  { %v1331_v47 = vpop.f32.mrb[3].mxu0  ;;  %1105 = vmatprep.subr.bf16.mxu0 %v1182_v37 }
  0xe9   :  { %v1144_v48 = vpack.i.bf16 %v1329_v46, %v1331_v47  ;;  %v1337_v49 = vpack.c.bf16 %v1329_v46, %v1331_v47  ;;  %1014 = vmatprep.mubr.f32.mxu1 %v1331_v47 }
  0xea   :  { %1015 = vmatmul.mubr.f32.gmra.mrb[2].mxu1 %v1329_v46 }
  0xef   :  { %1107 = vmatpush3.bf16.xpose.msra.mxu0 %v1337_v49 }
  0xf0   :  { %1109 = vmatprep.subr.bf16.mxu0 %v1103_v45 }
  0xf6   :  { %1026 = vmatmul.mubr.f32.vlgmr.msra.gmra.mrb[4].mxu0 %v237_v50 }
  0xf7   :  { %1111 = vmatpush3.bf16.msra.mxu0 %v1103_v45 }
 0x1b9   :  { %v1013_v51 = vpop.f32.mrb[0].mxu1 }
 0x1ba   :  { %315 = vperm.xlu1 %1133, %v1013_v51   ;;  %v218_v52 = vpop.f32.mrb[1].mxu1 }
 0x1bb   :  { %310 = vperm.xlu0 %1134, %v218_v52  }
 0x1bd   :  { %v1016_v53 = vpop.f32.mrb[2].mxu1 }
 0x1be   :  { %592 = vperm.xlu1 %1133, %v1016_v53   ;;  %v228_v54 = vpop.f32.mrb[3].mxu1 }
 0x1bf   :  { %1135 = vset.pattern.permute.xlu0 %v1187_v55 }
 0x1c0   :  { %736 = vperm.xlu0 %1135, %v1016_v53  }
 0x1c2   :  { %1137 = vset.pattern.permute.xlu1 %v1187_v55 }
 0x1c4   :  { %732 = vperm.xlu0 %1135, %v228_v54  }
 0x1c8   :  { %1136 = vset.pattern.permute.xlu0 %v1185_v40 }
 0x1c9   :  { %587 = vperm.xlu0 %1136, %v228_v54   ;;  %v304_v56 = vpop.f32.mrb[4].mxu0 }
 0x1ca   :  { %v1027_v57 = vpop.f32.mrb[5].mxu0  ;;  %v1345_v62 = vrot.slane %v304_v56, %v449_v60  ;;  %v321_v10 = vrot.slane %v304_v56, %v320_v3 }
 0x1cd   :  { %1138 = vset.pattern.permute.xlu0 %v1187_v55 }
 0x239   :  { %v316_v20 = vpop.permute.xlu1 %315 }
 0x23a   :  { %v311_v61 = vpop.permute.xlu0 %310  ;;  %v323_v23 = vadd.f32 %v321_v10, %v316_v20 }
 0x23b   :  { %v322_v24 = vadd.f32 %v321_v10, %v311_v61 }
 0x23c   :  { %v327_v26 = vmul.f32 0.2, %v323_v23  ;;  %vm325_vm10 = vcmp.ge.f32.partialorder %v323_v23, 0.0 }
 0x23d   :  { %v593_v21 = vpop.permute.xlu1 %592  ;;  %v326_v27 = vmul.f32 0.2, %v322_v24  ;;  %vm324_vm11 = vcmp.ge.f32.partialorder %v322_v24, 0.0 }
 0x23e   :  { %v596_v22 = vadd.f32 %v593_v21, %v321_v10  ;;  %v329_v30 = vsel %vm325_vm10, %v323_v23, %v327_v26 }
 0x23f   :  { %v737_v0 = vpop.permute.xlu0 %736  ;;  %v328_v31 = vsel %vm324_vm11, %v322_v24, %v326_v27  ;;  %v331_v33 = vadd.f32 %v329_v30, %v1316_v41 }
 0x240   :  { %v740_v1 = vadd.f32 %v737_v0, %v1345_v62  ;;  %v600_v25 = vmul.f32 0.2, %v596_v22  ;;  %vm598_vm9 = vcmp.ge.f32.partialorder %v596_v22, 0.0  ;;  %v330_v34 = vadd.f32 %v328_v31, %v1310_v39 }
 0x241   :  { %v336_v35 = vsel %vm332_vm12, %v331_v33, -inf }
 0x242   :  { %vm742_vm5 = vcmp.ge.f32.partialorder %v740_v1, 0.0  ;;  %v744_v2 = vmul.f32 0.2, %v740_v1  ;;  %v602_v28 = vsel %vm598_vm9, %v596_v22, %v600_v25  ;;  %v333_v36 = vsel %vm332_vm12, %v330_v34, -inf }
 0x243   :  { %v733_v4 = vpop.permute.xlu0 %732  ;;  %v612_v29 = vadd.f32 %v608_v5, %v602_v28 }
 0x244   :  { %v739_v6 = vadd.f32 %v733_v4, %v1345_v62  ;;  %v746_v7 = vsel %vm742_vm5, %v740_v1, %v744_v2 }
 0x245   :  { %v748_v8 = vadd.f32 %v746_v7, %v608_v5  ;;  %v617_v32 = vsel %vm613_vm7, %v612_v29, -inf }
 0x246   :  { %vm741_vm6 = vcmp.ge.f32.partialorder %v739_v6, 0.0  ;;  %v743_v9 = vmul.f32 0.2, %v739_v6 }
 0x247   :  { %v752_v11 = vsel %vm613_vm7, %v748_v8, -inf }
 0x248   :  { %753 = vmax.xlane.f32.xlu0 %v752_v11  ;;  %v588_v12 = vpop.permute.xlu0 %587  ;;  %v745_v13 = vsel %vm741_vm6, %v739_v6, %v743_v9 }
 0x249   :  { %v595_v14 = vadd.f32 %v588_v12, %v321_v10  ;;  %v747_v15 = vadd.f32 %v745_v13, %v606_v63 }
 0x24b   :  { %vm597_vm8 = vcmp.ge.f32.partialorder %v595_v14, 0.0  ;;  %v599_v16 = vmul.f32 0.2, %v595_v14  ;;  %v749_v17 = vsel %vm613_vm7, %v747_v15, -inf }
 0x24c   :  { %750 = vmax.xlane.f32.xlu1 %v749_v17 }
 0x24d   :  { %v601_v18 = vsel %vm597_vm8, %v595_v14, %v599_v16 }
 0x24e   :  { %v1351_v19 = vadd.f32 %v606_v63, %v601_v18 }
 0x250   :  { %v614_v37 = vsel %vm613_vm7, %v1351_v19, -inf }
 0x25d   :  { %440 = vperm.xlu1 %1137, %v218_v52  }
 0x25e   :  { %444 = vperm.xlu0 %1138, %v1013_v51  }
 0x27d   :  { %618 = vmax.xlane.f32.xlu0 %v617_v32 }
 0x281   :  { %337 = vmax.xlane.f32.xlu0 %v336_v35  ;;  %334 = vmax.xlane.f32.xlu1 %v333_v36 }
 0x285   :  { %615 = vmax.xlane.f32.xlu1 %v614_v37 }
 0x2d5   :  { %v754_v38 = vpop.xlane.xlu0 %753 }
 0x2d6   :  { %v756_v40 = vsub.f32 %v748_v8, %v754_v38 }
 0x2d8   :  { %v759_v45 = vmul.f32 1.442695, %v756_v40 }
 0x2d9   :  { %v751_v50 = vpop.xlane.xlu1 %750 }
 0x2da   :  { %1149 = vpow2.f32 %v759_v45  ;;  %v755_v51 = vsub.f32 %v747_v15, %v751_v50 }
 0x2dc   :  { %v757_v52 = vmul.f32 1.442695, %v755_v51 }
 0x2dd   :  { %v445_v55 = vpop.permute.xlu0 %444  ;;  %v441_v58 = vpop.permute.xlu1 %440 }
 0x2de   :  { %1151 = vpow2.f32 %v757_v52  ;;  %v452_v56 = vadd.f32 %v1345_v62, %v445_v55  ;;  %v451_v60 = vadd.f32 %v1345_v62, %v441_v58 }
 0x2e0   :  { %v456_v57 = vmul.f32 0.2, %v452_v56  ;;  %vm454_vm13 = vcmp.ge.f32.partialorder %v452_v56, 0.0  ;;  %v455_v63 = vmul.f32 0.2, %v451_v60  ;;  %vm453_vm14 = vcmp.ge.f32.partialorder %v451_v60, 0.0 }
 0x2e2   :  { %v458_v59 = vsel %vm454_vm13, %v452_v56, %v456_v57  ;;  %v457_v1 = vsel %vm453_vm14, %v451_v60, %v455_v63 }
 0x2e3   :  { %v460_v61 = vadd.f32 %v458_v59, %v1316_v41  ;;  %v459_v2 = vadd.f32 %v457_v1, %v1310_v39 }
 0x2e4   :  { %v1360_v53 = vpop.eup %1149 }
 0x2e5   :  { %765 = vrot.lane.b32.xlu0 %v1360_v53, %s1188_s3  ;;  %v464_v0 = vsel %vm332_vm12, %v460_v61, -inf  ;;  %v461_v5 = vsel %vm332_vm12, %v459_v2, -inf }
 0x2e8   :  { %v1364_v54 = vpop.eup %1151 }
 0x2e9   :  { %763 = vrot.lane.b32.xlu1 %v1364_v54, %s1188_s3 }
 0x304   :  { %465 = vmax.xlane.f32.xlu0 %v464_v0 }
 0x30a   :  { %v619_v3 = vpop.xlane.xlu0 %618 }
 0x30b   :  { %v621_v4 = vsub.f32 %v612_v29, %v619_v3 }
 0x30d   :  { %v624_v6 = vmul.f32 1.442695, %v621_v4  ;;  %462 = vmax.xlane.f32.xlu1 %v461_v5 }
 0x30e   :  { %v335_v7 = vpop.xlane.xlu1 %334  ;;  %v338_v13 = vpop.xlane.xlu0 %337 }
 0x30f   :  { %1153 = vpow2.f32 %v624_v6  ;;  %v339_v39 = vsub.f32 %v330_v34, %v335_v7  ;;  %v340_v15 = vsub.f32 %v331_v33, %v338_v13 }
 0x311   :  { %v341_v11 = vmul.f32 1.442695, %v339_v39  ;;  %v343_v16 = vmul.f32 1.442695, %v340_v15 }
 0x312   :  { %v616_v8 = vpop.xlane.xlu1 %615 }
 0x313   :  { %v620_v62 = vsub.f32 %v1351_v19, %v616_v8 }
 0x315   :  { %v622_v41 = vmul.f32 1.442695, %v620_v62 }
 0x317   :  { %1155 = vpow2.f32 %v622_v41 }
 0x318   :  { %1157 = vpow2.f32 %v341_v11 }
 0x319   :  { %v1375_v9 = vpop.eup %1153  ;;  %1159 = vpow2.f32 %v343_v16 }
 0x31a   :  { %630 = vrot.lane.b32.xlu0 %v1375_v9, %s1188_s3 }
 0x321   :  { %v1379_v10 = vpop.eup %1155 }
 0x322   :  { %628 = vrot.lane.b32.xlu1 %v1379_v10, %s1188_s3  ;;  %v1158_v12 = vpop.eup %1157 }
 0x323   :  { %v345_v14 = vsel %vm332_vm12, %v1158_v12, 0.0  ;;  %v1160_v19 = vpop.eup %1159 }
 0x324   :  { %v348_v20 = vsel %vm332_vm12, %v1160_v19, 0.0 }
 0x346   :  { %346 = vadd.xlane.f32.xlu1 %v345_v14 }
 0x357   :  { %v766_v17 = vpop.permute.xlu0 %765 }
 0x358   :  { %v772_v18 = vsel %vm332_vm12, %v766_v17, 0.0 }
 0x359   :  { %773 = vadd.xlane.f32.xlu0 %v772_v18 }
 0x35b   :  { %v764_v23 = vpop.permute.xlu1 %763 }
 0x35c   :  { %v769_v27 = vsel %vm332_vm12, %v764_v23, 0.0 }
 0x35d   :  { %349 = vadd.xlane.f32.xlu0 %v348_v20 }
 0x391   :  { %v466_v21 = vpop.xlane.xlu0 %465 }
 0x392   :  { %v468_v25 = vsub.f32 %v460_v61, %v466_v21 }
 0x394   :  { %v471_v29 = vmul.f32 1.442695, %v468_v25 }
 0x395   :  { %v631_v22 = vpop.permute.xlu0 %630 }
 0x396   :  { %v637_v24 = vsel %vm332_vm12, %v631_v22, 0.0 }
 0x397   :  { %638 = vadd.xlane.f32.xlu1 %v637_v24 }
 0x39a   :  { %v463_v26 = vpop.xlane.xlu1 %462 }
 0x39b   :  { %v467_v28 = vsub.f32 %v459_v2, %v463_v26  ;;  %770 = vadd.xlane.f32.xlu1 %v769_v27 }
 0x39d   :  { %v469_v30 = vmul.f32 1.442695, %v467_v28 }
 0x39e   :  { %v629_v35 = vpop.permute.xlu1 %628 }
 0x39f   :  { %1161 = vpow2.f32 %v469_v30  ;;  %v634_v36 = vsel %vm332_vm12, %v629_v35, 0.0 }
 0x3a0   :  { %1163 = vpow2.f32 %v471_v29 }
 0x3a9   :  { %v1162_v31 = vpop.eup %1161 }
 0x3aa   :  { %v473_v32 = vsel %vm332_vm12, %v1162_v31, 0.0  ;;  %v1164_v33 = vpop.eup %1163 }
 0x3ab   :  { %474 = vadd.xlane.f32.xlu0 %v473_v32  ;;  %v476_v34 = vsel %vm332_vm12, %v1164_v33, 0.0 }
 0x3ac   :  { %1140 = vrot.lane.b32.xlu1 %v1139_v44, %s1189_s27 }
 0x3af   :  { %477 = vadd.xlane.f32.xlu0 %v476_v34 }
 0x3c5   :  { %1145 = vrot.lane.b32.xlu0 %v1144_v48, %s1189_s27 }
 0x3d0   :  { %635 = vadd.xlane.f32.xlu1 %v634_v36 }
 0x3d3   :  { %v347_v37 = vpop.xlane.xlu1 %346 }
 0x3d4   :  { %1165 = vrcp.f32 %v347_v37 }
 0x3de   :  { %v1166_v38 = vpop.eup %1165 }
 0x3df   :  { %v353_v40 = vmul.f32 %v1166_v38, %v1158_v12 }
 0x3e1   :  { %1032 = vmatprep.mubr.msk.f32.mxu0 %vm332_vm12, %v353_v40 }
 0x3e6   :  { %v774_v42 = vpop.xlane.xlu0 %773 }
 0x3ea   :  { %v350_v43 = vpop.xlane.xlu0 %349 }
 0x3eb   :  { %1167 = vrcp.f32 %v350_v43 }
 0x3f5   :  { %v1168_v44 = vpop.eup %1167 }
 0x3f6   :  { %v354_v45 = vmul.f32 %v1168_v44, %v1160_v19 }
 0x3f8   :  { %1033 = vmatmul.mubr.msk.f32.vlgmr.msra.gmra.mrb[6].mxu0 %vm332_vm12, %v354_v45 }
 0x424   :  { %v639_v50 = vpop.xlane.xlu1 %638 }
 0x428   :  { %v771_v46 = vpop.xlane.xlu1 %770 }
 0x429   :  { %1169 = vrcp.f32 %v771_v46 }
 0x42a   :  { %1171 = vrcp.f32 %v774_v42 }
 0x42b   :  { %1173 = vrcp.f32 %v639_v50 }
 0x42c   :  { %v1141_v47 = vpop.permute.xlu1 %1140 }
 0x42d   :  { %v1143_v48 = vunpack.i.h.bf16 %v1141_v47  ;;  %v1142_v51 = vunpack.i.l.bf16 %v1141_v47 }
 0x42f   :  { %v1112_v52 = vpack.c.bf16 %v1143_v48, %v1142_v51 }
 0x431   :  { %1113 = vmatprep.subr.bf16.mxu0 %v1112_v52 }
 0x432   :  { %1115 = vmatpush3.bf16.msra.mxu0 %v1112_v52 }
 0x433   :  { %v1170_v55 = vpop.eup %1169  ;;  %1117 = vmatprep.subr.bf16.mxu0 %v1337_v49 }
 0x434   :  { %v777_v56 = vmul.f32 %v1170_v55, %v1364_v54  ;;  %v1172_v57 = vpop.eup %1171 }
 0x435   :  { %v778_v59 = vmul.f32 %v1172_v57, %v1360_v53  ;;  %v1174_v60 = vpop.eup %1173 }
 0x436   :  { %781 = vrot.lane.b32.xlu1 %v777_v56, %s1188_s3  ;;  %v643_v63 = vmul.f32 %v1174_v60, %v1375_v9 }
 0x438   :  { %v475_v58 = vpop.xlane.xlu0 %474 }
 0x439   :  { %1175 = vrcp.f32 %v475_v58 }
 0x43a   :  { %783 = vrot.lane.b32.xlu1 %v778_v59, %s1188_s3 }
 0x43c   :  { %v478_v61 = vpop.xlane.xlu0 %477 }
 0x43d   :  { %1177 = vrcp.f32 %v478_v61 }
 0x43e   :  { %648 = vrot.lane.b32.xlu1 %v643_v63, %s1188_s3 }
 0x440   :  { %v1146_v0 = vpop.permute.xlu0 %1145 }
 0x441   :  { %v1148_v1 = vunpack.i.h.bf16 %v1146_v0  ;;  %v1147_v2 = vunpack.i.l.bf16 %v1146_v0 }
 0x443   :  { %v1176_v54 = vpop.eup %1175  ;;  %v1120_v3 = vpack.c.bf16 %v1148_v1, %v1147_v2 }
 0x444   :  { %v481_v4 = vmul.f32 %v1176_v54, %v1162_v31 }
 0x445   :  { %1121 = vmatprep.subr.bf16.mxu1 %v1120_v3 }
 0x446   :  { %1039 = vmatprep.mubr.msk.f32.mxu0 %vm332_vm12, %v481_v4  ;;  %1123 = vmatpush3.bf16.msra.mxu1 %v1120_v3  ;;  %583 = vst.msk [vmem:[%s1470_s6] sm:$0xff] %vm332_vm12, %v481_v4 }
 0x447   :  { %v1178_v53 = vpop.eup %1177 }
 0x448   :  { %v482_v5 = vmul.f32 %v1178_v53, %v1164_v33 }
 0x44a   :  { %1040 = vmatmul.mubr.msk.f32.vlgmr.msra.gmra.mrb[8].mxu0 %vm332_vm12, %v482_v5  ;;  %584 = vst.msk [vmem:[%s1470_s6 + $0x8] sm:$0xff] %vm332_vm12, %v482_v5 }
 0x44b   :  { %1119 = vmatpush3.bf16.msra.mxu0 %v1337_v49 }
 0x45d   :  { %v636_v6 = vpop.xlane.xlu1 %635 }
 0x45e   :  { %1179 = vrcp.f32 %v636_v6 }
 0x468   :  { %v1180_v7 = vpop.eup %1179 }
 0x469   :  { %v642_v8 = vmul.f32 %v1180_v7, %v1379_v10 }
 0x46b   :  { %646 = vrot.lane.b32.xlu0 %v642_v8, %s1188_s3 }
 0x4a8   :  { %v782_v62 = vpop.permute.xlu1 %781 }
 0x4a9   :  { %908 = vst.msk [vmem:[%s1470_s6 + $0x10] sm:$0xff] %vm332_vm12, %v782_v62  ;;  %1053 = vmatprep.mubr.msk.f32.mxu1 %vm332_vm12, %v782_v62 }
 0x4ac   :  { %v784_v41 = vpop.permute.xlu1 %783 }
 0x4ad   :  { %909 = vst.msk [vmem:[%s1470_s6 + $0x18] sm:$0xff] %vm332_vm12, %v784_v41  ;;  %1054 = vmatmul.mubr.msk.f32.vlgmr.msra.gmra.mrb[4].mxu1 %vm332_vm12, %v784_v41 }
 0x4b0   :  { %v649_v39 = vpop.permute.xlu1 %648 }
 0x4cb   :  { %v1034_v49 = vpop.f32.mrb[6].mxu0 }
 0x4cc   :  { %438 = vst.msk [vmem:[%s1471_s5 + $0x8] sm:$0xff] %vm436_vm15, %v1034_v49  ;;  %v427_v9 = vpop.f32.mrb[7].mxu0 }
 0x4cd   :  { %437 = vst.msk [vmem:[%s1471_s5] sm:$0xff] %vm436_vm15, %v427_v9 }
 0x4dd   :  { %v647_v10 = vpop.permute.xlu0 %646 }
 0x4de   :  { %1046 = vmatprep.mubr.msk.f32.mxu0 %vm332_vm12, %v647_v10 }
 0x4df   :  { %1047 = vmatmul.mubr.msk.f32.vlgmr.msra.gmra.mrb[10].mxu0 %vm332_vm12, %v649_v39 }
 0x51d   :  { %v1041_v11 = vpop.f32.mrb[8].mxu0 }
 0x51e   :  { %576 = vrot.lane.b32.xlu1 %v1041_v11, %s1189_s27  ;;  %v563_v12 = vpop.f32.mrb[9].mxu0 }
 0x51f   :  { %574 = vrot.lane.b32.xlu0 %v563_v12, %s1189_s27 }
 0x580   :  { %v1055_v13 = vpop.f32.mrb[4].mxu1 }
 0x581   :  { %876 = vrot.lane.b32.xlu1 %v1055_v13, %s1189_s27  ;;  %v863_v14 = vpop.f32.mrb[5].mxu1 }
 0x582   :  { %874 = vrot.lane.b32.xlu0 %v863_v14, %s1189_s27 }
 0x590   :  { %v577_v15 = vpop.permute.xlu1 %576 }
 0x591   :  { %582 = vst.msk [vmem:[%s1471_s5 + $0x8] sm:$0xff] %vm580_vm0, %v577_v15  ;;  %v575_v16 = vpop.permute.xlu0 %574 }
 0x592   :  { %581 = vst.msk [vmem:[%s1471_s5] sm:$0xff] %vm580_vm0, %v575_v16 }
 0x5b2   :  { %v1048_v17 = vpop.f32.mrb[10].mxu0 }
 0x5b3   :  { %730 = vst.msk [vmem:[%s1471_s5 + $0x18] sm:$0xff] %vm436_vm15, %v1048_v17  ;;  %v720_v18 = vpop.f32.mrb[11].mxu0 }
 0x5b4   :  { %729 = vst.msk [vmem:[%s1471_s5 + $0x10] sm:$0xff] %vm436_vm15, %v720_v18 }
 0x5f3   :  { %v877_v19 = vpop.permute.xlu1 %876 }
 0x5f4   :  { %881 = vst.msk [vmem:[%s1471_s5 + $0x18] sm:$0xff] %vm580_vm0, %v877_v19  ;;  %v875_v20 = vpop.permute.xlu0 %874 }
 0x5f5   :  { %880 = vst.msk [vmem:[%s1471_s5 + $0x10] sm:$0xff] %vm580_vm0, %v875_v20 }

</bundles_post_ra>
